<compile_context>
chip_gen: v5e
topology: v5e:2x2
jax: 0.10.0
libtpu: 0.0.40
codegen_flags: <defaults>
</compile_context>

<pallas_src>
import functools
import math

import jax
import jax.numpy as jnp
from jax.experimental import pallas as pl
from jax.experimental.pallas import tpu as pltpu

BN_EPS = 1e-5
LRELU_SLOPE = 0.2


# --------------------------- hardware-aware tiling --------------------------- #

def _vmem_budget_bytes():
    """Generation-aware scoped-VMEM budget (review: no fixed 32 MiB)."""
    try:
        cap = pltpu.get_tpu_info().vmem_capacity_bytes
    except Exception:
        cap = None
    if cap is None:
        return 48 * 1024 * 1024                       # safe on every generation
    if cap >= 128 * 1024 * 1024:                      # v5e / v6e
        return 100 * 1024 * 1024
    return min(int(cap * 3 // 4), 48 * 1024 * 1024)  # v7x (64 MiB physical)


def _pick_tile(extent, candidates):
    for t in candidates:
        if t <= extent and extent % t == 0:
            return t
    return extent                                     # fall back to full extent


def _row_tile(m, budget):
    cands = ((1024, 512, 256, 128, 64, 32, 16) if budget >= 96 * 1024 * 1024
             else (512, 256, 128, 64, 32, 16))        # multiples of 16 (bf16 packing)
    return _pick_tile(m, cands)


def _col_tile(n, budget):
    cands = ((1024, 512, 256, 128) if budget >= 96 * 1024 * 1024
             else (512, 256, 128))                    # multiples of 128 (lane-dense)
    return _pick_tile(n, cands)


def _round_up(x, m):
    return ((x + m - 1) // m) * m


# ------------------------------ Pallas kernels ------------------------------ #

def _matmul_bn_lrelu_kernel(x_ref, w_ref, rr_ref, rb_ref, o_ref, sum_ref, ssq_ref,
                            *, count):
    """(patches @ W) -> training-mode BatchNorm (batch stats) -> LeakyReLU(0.2).

    grid = (model c, N tile n, M row tile m).  The (M, TN) output block is VMEM
    resident across the m axis; per-column sum / sum-of-squares accumulate in f32
    scratch and the last m step pools them per BN channel with two skinny matmuls
    (rr: (TN, nch) group-reduce, rb: (nch, TN) broadcast), then normalizes the
    resident block in place and stores bf16.
    """
    m = pl.program_id(2)
    nm = pl.num_programs(2)
    tm = x_ref.shape[0]

    @pl.when(m == 0)
    def _init():
        sum_ref[...] = jnp.zeros_like(sum_ref)
        ssq_ref[...] = jnp.zeros_like(ssq_ref)

    y = jnp.dot(x_ref[...], w_ref[...], preferred_element_type=jnp.float32)
    sum_ref[...] += jnp.sum(y, axis=0, keepdims=True)
    ssq_ref[...] += jnp.sum(y * y, axis=0, keepdims=True)
    row0 = pl.multiple_of(m * tm, tm)
    o_ref[pl.ds(row0, tm), :] = y.astype(o_ref.dtype)

    @pl.when(m == nm - 1)
    def _finalize():
        inv_count = 1.0 / count
        s_ch = jnp.dot(sum_ref[...], rr_ref[...], preferred_element_type=jnp.float32)
        q_ch = jnp.dot(ssq_ref[...], rr_ref[...], preferred_element_type=jnp.float32)
        mean = jnp.dot(s_ch, rb_ref[...], preferred_element_type=jnp.float32) * inv_count
        mean_sq = jnp.dot(q_ch, rb_ref[...], preferred_element_type=jnp.float32) * inv_count
        var = jnp.maximum(mean_sq - mean * mean, 0.0)   # clamp: 1-pass var can dip < 0
        inv_std = jax.lax.rsqrt(var + BN_EPS)
        yn = (o_ref[...].astype(jnp.float32) - mean) * inv_std   # gamma=1, beta=0
        o_ref[...] = jnp.where(yn >= 0.0, yn, LRELU_SLOPE * yn).astype(o_ref.dtype)


def _matmul_tanh_kernel(x_ref, w_ref, o_ref):
    y = jnp.dot(x_ref[...], w_ref[...], preferred_element_type=jnp.float32)
    o_ref[...] = jnp.tanh(y).astype(o_ref.dtype)


def fused_convt_bn_lrelu(patches, weights, rr, rb, *, count):
    """patches (C,M,Kp) bf16 @ weights (C,Kp,Np) bf16 -> BN + LeakyReLU -> bf16."""
    C, M, Kp = patches.shape
    Np = weights.shape[2]
    nch = rr.shape[1]
    budget = _vmem_budget_bytes()
    tn = _col_tile(Np, budget)
    # keep the resident (M, TN) bf16 block well inside the scoped-VMEM budget
    while tn > 128 and Np % (tn // 2) == 0 and M * tn * 2 > budget // 4:
        tn //= 2
    # TODO(synk): two-pass streaming-BN fallback for layers where even TN=128 does
    # not fit the resident block (very large layers on v7x); not needed here.
    tm = _row_tile(M, budget)
    cost = pl.CostEstimate(
        flops=2 * C * M * Kp * Np + 6 * C * M * Np,
        transcendentals=C * Np,
        bytes_accessed=C * (M * Kp + Kp * Np + M * Np) * 2)
    return pl.pallas_call(
        functools.partial(_matmul_bn_lrelu_kernel, count=float(count)),
        out_shape=jax.ShapeDtypeStruct((C, M, Np), jnp.bfloat16),
        grid=(C, Np // tn, M // tm),
        in_specs=[
            pl.BlockSpec((None, tm, Kp), lambda c, n, m: (c, m, 0)),
            pl.BlockSpec((None, Kp, tn), lambda c, n, m: (c, 0, n)),
            pl.BlockSpec((tn, nch), lambda c, n, m: (n, 0)),
            pl.BlockSpec((nch, tn), lambda c, n, m: (0, n)),
        ],
        out_specs=pl.BlockSpec((None, M, tn), lambda c, n, m: (c, 0, n)),
        scratch_shapes=[pltpu.VMEM((1, tn), jnp.float32),
                        pltpu.VMEM((1, tn), jnp.float32)],
        compiler_params=pltpu.CompilerParams(
            dimension_semantics=("parallel", "parallel", "arbitrary"),
            vmem_limit_bytes=budget),
        cost_estimate=cost,
    )(patches, weights, rr, rb)


def fused_convt_tanh(patches, weights):
    """patches (C,M,Kp) bf16 @ weights (C,Kp,Np) bf16 -> tanh -> (C,M,Np) f32."""
    C, M, Kp = patches.shape
    Np = weights.shape[2]
    budget = _vmem_budget_bytes()
    tn = _col_tile(Np, budget)
    tm = _row_tile(M, budget)
    cost = pl.CostEstimate(
        flops=2 * C * M * Kp * Np,
        transcendentals=C * M * Np,
        bytes_accessed=C * (M * Kp * 2 + Kp * Np * 2 + M * Np * 4))
    return pl.pallas_call(
        _matmul_tanh_kernel,
        out_shape=jax.ShapeDtypeStruct((C, M, Np), jnp.float32),
        grid=(C, Np // tn, M // tm),
        in_specs=[
            pl.BlockSpec((None, tm, Kp), lambda c, n, m: (c, m, 0)),
            pl.BlockSpec((None, Kp, tn), lambda c, n, m: (c, 0, n)),
        ],
        out_specs=pl.BlockSpec((None, tm, tn), lambda c, n, m: (c, m, n)),
        compiler_params=pltpu.CompilerParams(
            dimension_semantics=("parallel", "parallel", "parallel"),
            vmem_limit_bytes=budget),
        cost_estimate=cost,
    )(patches, weights)


# --------------------- sub-pixel ConvTranspose lowering --------------------- #

# For output parity p (0=even, 1=odd) and 3x3-window offset d in {0,1,2}, the tap
# of the original 4x4 transposed-conv kernel that feeds it (missing -> unused).
_TAP = {(0, 0): 3, (0, 1): 1, (1, 1): 2, (1, 2): 0}


def _subpixel_weight(w):
    """torch ConvTranspose2d weight (Cin, Cout, 4, 4) for k=4,s=2,p=1 ->
    (9*Cin, 4*Cout) matrix of the equivalent 3x3 stride-1 conv.  Output columns are
    channel-major (cout, py, px) so each BN channel's 4 sub-pixel phases are
    contiguous (allows N tiling with per-tile BN stats)."""
    cin, cout = w.shape[0], w.shape[1]
    wm = jnp.zeros((3, 3, cin, cout, 2, 2), w.dtype)
    for py in range(2):
        for px in range(2):
            for dy in range(3):
                ky = _TAP.get((py, dy))
                if ky is None:
                    continue
                for dx in range(3):
                    kx = _TAP.get((px, dx))
                    if kx is None:
                        continue
                    wm = wm.at[dy, dx, :, :, py, px].set(w[:, :, ky, kx])
    return wm.reshape(9 * cin, 4 * cout)


def _reduce_matrices(n_real, n_pad, group):
    """Skinny BN pooling matrices (replaces the O(N^2) pool matrix): rr (n_pad, nch)
    group-reduce, rb (nch, n_pad) broadcast.  Zero-padded columns map to no channel."""
    nch = n_real // group
    col = jnp.arange(n_pad)
    rr = ((col[:, None] // group) == jnp.arange(nch)[None, :]) & (col[:, None] < n_real)
    rr = rr.astype(jnp.float32)
    return rr, jnp.transpose(rr)


def _subpixel_patches(h, k_pad):
    """h (C, B, H, W, Cin) -> bf16 patches (C, B*H*W, k_pad): 3x3 windows of the
    1-padded input, column order (dy, dx, cin), zero-padded to k_pad columns."""
    C, B, H, W, Cin = h.shape
    hp = jnp.pad(h, ((0, 0), (0, 0), (1, 1), (1, 1), (0, 0)))
    taps = [hp[:, :, dy:dy + H, dx:dx + W, :] for dy in range(3) for dx in range(3)]
    p = jnp.concatenate(taps, axis=-1).reshape(C, B * H * W, 9 * Cin)
    p = jnp.pad(p, ((0, 0), (0, 0), (0, k_pad - 9 * Cin)))
    return p.astype(jnp.bfloat16), (H, W)


def _unshuffle(y, B, H, W, cout):
    """(C, B*H*W, >=4*cout) channel-major sub-pixel columns -> NHWC (C,B,2H,2W,cout)."""
    C = y.shape[0]
    y = y[:, :, :4 * cout].reshape(C, B, H, W, cout, 2, 2)   # (..., cout, py, px)
    y = jnp.transpose(y, (0, 1, 2, 5, 3, 6, 4))              # interleave parities
    return y.reshape(C, B, 2 * H, 2 * W, cout)


# ------------------------------ parameters ---------------------------------- #

def init_params(key, *, z_dim, im_channels, conv_blocks, gen_channels):
    """One list of raw torch-layout ConvTranspose2d weights per output-channel model."""
    params = []
    for _c in range(im_channels):
        ws = []
        for i in range(conv_blocks + 1):
            if i == 0:
                shape = (z_dim, gen_channels, 4, 4)
            elif i == conv_blocks:
                shape = (im_channels, im_channels, 4, 4)
            else:
                shape = (gen_channels // 2 ** (i - 1), gen_channels // 2 ** i, 4, 4)
            key, sub = jax.random.split(key)
            ws.append(0.02 * jax.random.normal(sub, shape, dtype=jnp.float32))
        params.append(ws)
    return params


def prepare_params(params, *, z_dim, gen_channels, conv_blocks, im_channels):
    """One-time weight repacking (hoisted out of the forward pass): bf16 matmul
    matrices (K padded to x16, N padded to x128) + skinny f32 BN pooling matrices.
    Returns arrays only (pytree-safe for jit)."""
    C, gc = im_channels, gen_channels

    # Block 0: fold all C models into one lane-dense matmul N dim (latent shared).
    # Columns are (model, cout, ky, kx), spatial fastest -> channel = col // 16.
    k0 = _round_up(z_dim, 16)
    n0_real = C * gc * 16
    n0 = _round_up(n0_real, 128)
    w0 = jnp.concatenate([params[c][0].reshape(z_dim, gc * 16) for c in range(C)],
                         axis=1)
    w0 = jnp.pad(w0, ((0, k0 - z_dim), (0, n0 - n0_real))).astype(jnp.bfloat16)[None]
    rr0, rb0 = _reduce_matrices(n0_real, n0, 16)

    mids = []
    for i in range(1, conv_blocks):
        cin, cout = params[0][i].shape[0], params[0][i].shape[1]
        kp, npad = _round_up(9 * cin, 16), _round_up(4 * cout, 128)
        wm = jnp.stack([
            jnp.pad(_subpixel_weight(params[c][i]),
                    ((0, kp - 9 * cin), (0, npad - 4 * cout)))
            for c in range(C)]).astype(jnp.bfloat16)
        rr, rb = _reduce_matrices(4 * cout, npad, 4)
        mids.append((wm, rr, rb))

    cin, cout = params[0][conv_blocks].shape[0], params[0][conv_blocks].shape[1]
    kp, npad = _round_up(9 * cin, 16), _round_up(4 * cout, 128)
    wf = jnp.stack([
        jnp.pad(_subpixel_weight(params[c][conv_blocks]),
                ((0, kp - 9 * cin), (0, npad - 4 * cout)))
        for c in range(C)]).astype(jnp.bfloat16)

    return {"block0": (w0, rr0, rb0), "mid": mids, "final": wf}


# ------------------------------- forward ------------------------------------ #

def gen_conv_forward(x, prepped, *, z_dim, im_size, im_channels, conv_blocks,
                     gen_channels):
    B = x.shape[0]
    C, gc = im_channels, gen_channels

    # Block 0: ConvT(z, gc, 4, 1, 0) on a 1x1 input == matmul; the latent is shared
    # by all C per-channel models so their weights are folded into N (one launch).
    w0, rr0, rb0 = prepped["block0"]
    k0 = w0.shape[1]
    z = x.reshape(B, -1).astype(jnp.bfloat16)            # torch: reshape to (B,z,1,1)
    z = jnp.pad(z, ((0, 0), (0, k0 - z_dim)))
    y = fused_convt_bn_lrelu(z[None], w0, rr0, rb0, count=B * 16)   # (1, B, n0) bf16
    n0_real = C * gc * 16
    h = y[0, :, :n0_real].reshape(B, C, gc, 4, 4)
    h = jnp.transpose(h, (1, 0, 3, 4, 2))                # (C, B, 4, 4, gc) NHWC/model

    # Middle blocks: ConvT(k=4, s=2, p=1) + BN + LeakyReLU in sub-pixel form.
    for i, (wm, rr, rb) in enumerate(prepped["mid"], start=1):
        cout = gc // 2 ** i
        patches, (H, W) = _subpixel_patches(h, wm.shape[1])
        y = fused_convt_bn_lrelu(patches, wm, rr, rb, count=B * H * W * 4)
        h = _unshuffle(y, B, H, W, cout)                 # (C, B, 2H, 2W, cout) bf16

    # Final block: ConvT(Cim, Cim, 4, 2, 1) + Tanh (no BN), f32 output.
    wf = prepped["final"]
    patches, (H, W) = _subpixel_patches(h, wf.shape[1])
    y = fused_convt_tanh(patches, wf)
    h = _unshuffle(y, B, H, W, im_channels)              # (C, B, OH, OW, Cim)

    out = jnp.transpose(h, (1, 0, 4, 2, 3))              # (B, C, Cim, OH, OW)
    if out.shape[2] == 1:                                # torch.squeeze(dim=2)
        out = jnp.squeeze(out, axis=2)
    return out[:, :, :im_size, :im_size]


# ------------------- pure-JAX reference (zero-dilated form) ------------------ #

def _reference_forward(x, params, *, z_dim, im_size, im_channels, conv_blocks,
                       gen_channels):
    """f32 reference using the classic zero-dilated / flipped-kernel lowering."""
    def convt_s2p1(h, w):                                 # h NHWC, w (Cin,Cout,4,4)
        B, H, Wd, Cin = h.shape
        xd = jnp.zeros((B, 2 * H - 1, 2 * Wd - 1, Cin), h.dtype)
        xd = xd.at[:, ::2, ::2, :].set(h)
        xp = jnp.pad(xd, ((0, 0), (2, 2), (2, 2), (0, 0)))
        OH, OW = 2 * H, 2 * Wd
        wf = w[:, :, ::-1, ::-1]
        wm = jnp.transpose(wf, (2, 3, 0, 1)).reshape(-1, w.shape[1])
        rows = []
        for ky in range(4):
            cols = [xp[:, ky:ky + OH, kx:kx + OW, :] for kx in range(4)]
            rows.append(jnp.stack(cols, axis=3))
        patches = jnp.stack(rows, axis=3).reshape(B * OH * OW, 16 * Cin)
        return (patches @ wm).reshape(B, OH, OW, w.shape[1])

    def bn_lrelu(y):
        mean = jnp.mean(y, axis=(0, 1, 2), keepdims=True)
        var = jnp.mean((y - mean) ** 2, axis=(0, 1, 2), keepdims=True)
        y = (y - mean) * jax.lax.rsqrt(var + BN_EPS)
        return jnp.where(y >= 0.0, y, LRELU_SLOPE * y)

    B = x.shape[0]
    xf = x.reshape(B, -1)
    outs = []
    for c in range(im_channels):
        ws = params[c]
        w0m = jnp.transpose(ws[0], (0, 2, 3, 1)).reshape(z_dim, 16 * gen_channels)
        h = bn_lrelu((xf @ w0m).reshape(B, 4, 4, gen_channels))
        for i in range(1, conv_blocks):
            h = bn_lrelu(convt_s2p1(h, ws[i]))
        h = jnp.tanh(convt_s2p1(h, ws[conv_blocks]))
        outs.append(jnp.transpose(h, (0, 3, 1, 2)))
    out = jnp.stack(outs, axis=1)
    if out.shape[2] == 1:
        out = jnp.squeeze(out, axis=2)
    return out[:, :, :im_size, :im_size]


# ---------------------------------- main ------------------------------------ #

if __name__ == "__main__":
    Z_DIM = 32
    IMG_SIZE = 16
    N_CHANNELS = 1
    BATCH = 2

    conv_blocks = int(math.ceil(math.log2((IMG_SIZE + 3) // 4)))   # = 2
    gen_channels = N_CHANNELS * 2 ** (conv_blocks - 1)             # = 2

    key = jax.random.PRNGKey(0)
    kx, kp = jax.random.split(key)
    x = jax.random.normal(kx, (BATCH, Z_DIM), dtype=jnp.float32)   # latent z

    params = init_params(kp, z_dim=Z_DIM, im_channels=N_CHANNELS,
                         conv_blocks=conv_blocks, gen_channels=gen_channels)
    prepped = prepare_params(params, z_dim=Z_DIM, gen_channels=gen_channels,
                             conv_blocks=conv_blocks, im_channels=N_CHANNELS)

    fwd = jax.jit(functools.partial(
        gen_conv_forward, z_dim=Z_DIM, im_size=IMG_SIZE, im_channels=N_CHANNELS,
        conv_blocks=conv_blocks, gen_channels=gen_channels))

    out = fwd(x, prepped)
    jax.block_until_ready(out)

    assert out.shape == (BATCH, N_CHANNELS, IMG_SIZE, IMG_SIZE), out.shape
    assert bool(jnp.all(jnp.abs(out) <= 1.0)), "tanh output out of range"

    ref = _reference_forward(x, params, z_dim=Z_DIM, im_size=IMG_SIZE,
                             im_channels=N_CHANNELS, conv_blocks=conv_blocks,
                             gen_channels=gen_channels)
    max_err = float(jnp.max(jnp.abs(out - ref)))
    assert max_err < 4e-2, f"mismatch vs reference: max |diff| = {max_err}"

    print("KERNEL_OK")
</pallas_src>

<mosaic_0001>
module attributes {stable_mosaic.version = 11 : i64} {
  func.func @_matmul_bn_lrelu_kernel(%arg0: i32, %arg1: i32, %arg2: i32, %arg3: memref<1x2x32xbf16, #tpu.memory_space<vmem>>, %arg4: memref<1x32x128xbf16, #tpu.memory_space<vmem>>, %arg5: memref<128x2xf32, #tpu.memory_space<vmem>>, %arg6: memref<2x128xf32, #tpu.memory_space<vmem>>, %arg7: memref<1x2x128xbf16, #tpu.memory_space<vmem>>, %arg8: memref<1x128xf32, #tpu.memory_space<vmem>>, %arg9: memref<1x128xf32, #tpu.memory_space<vmem>>) attributes {dimension_semantics = [#tpu.dimension_semantics<parallel>, #tpu.dimension_semantics<parallel>, #tpu.dimension_semantics<arbitrary>], iteration_bounds = array<i64: 1, 1, 1>, scalar_prefetch = 0 : i64, scratch_operands = 2 : i64, tpu.core_type = #tpu.core_type<tc>, window_params = [{transform_indices = @transform_0, window_bounds = array<i64: 1, 2, 32>}, {transform_indices = @transform_1, window_bounds = array<i64: 1, 32, 128>}, {transform_indices = @transform_2, window_bounds = array<i64: 128, 2>}, {transform_indices = @transform_3, window_bounds = array<i64: 2, 128>}, {transform_indices = @transform_4, window_bounds = array<i64: 1, 2, 128>}]} {
    %c0_i32 = arith.constant 0 : i32
    %0 = arith.cmpi eq, %arg2, %c0_i32 : i32
    %1 = arith.extui %0 : i1 to i32
    %c0_i32_0 = arith.constant 0 : i32
    %2 = arith.cmpi ne, %1, %c0_i32_0 : i32
    scf.if %2 {
      %cst_20 = arith.constant 0.000000e+00 : f32
      %29 = vector.broadcast %cst_20 : f32 to vector<1x128xf32>
      %c0_21 = arith.constant 0 : index
      %c0_22 = arith.constant 0 : index
      %30 = vector.load %arg8[%c0_21, %c0_22] : memref<1x128xf32, #tpu.memory_space<vmem>>, vector<1x128xf32>
      tpu.vector_store %arg8[%c0_21, %c0_22], %29 {strides = array<i32>} : memref<1x128xf32, #tpu.memory_space<vmem>>, vector<1x128xf32>,
      %cst_23 = arith.constant 0.000000e+00 : f32
      %31 = vector.broadcast %cst_23 : f32 to vector<1x128xf32>
      %c0_24 = arith.constant 0 : index
      %c0_25 = arith.constant 0 : index
      %32 = vector.load %arg9[%c0_24, %c0_25] : memref<1x128xf32, #tpu.memory_space<vmem>>, vector<1x128xf32>
      tpu.vector_store %arg9[%c0_24, %c0_25], %31 {strides = array<i32>} : memref<1x128xf32, #tpu.memory_space<vmem>>, vector<1x128xf32>,
    } else {
    }
    %c0 = arith.constant 0 : index
    %c0_1 = arith.constant 0 : index
    %c0_2 = arith.constant 0 : index
    %3 = vector.load %arg3[%c0, %c0_1, %c0_2] : memref<1x2x32xbf16, #tpu.memory_space<vmem>>, vector<1x2x32xbf16>
    %4 = vector.shape_cast %3 : vector<1x2x32xbf16> to vector<2x32xbf16>
    %c0_3 = arith.constant 0 : index
    %c0_4 = arith.constant 0 : index
    %c0_5 = arith.constant 0 : index
    %5 = vector.load %arg4[%c0_3, %c0_4, %c0_5] : memref<1x32x128xbf16, #tpu.memory_space<vmem>>, vector<1x32x128xbf16>
    %6 = vector.shape_cast %5 : vector<1x32x128xbf16> to vector<32x128xbf16>
    %cst = arith.constant dense<0.000000e+00> : vector<2x128xf32>
    %7 = tpu.matmul %4, %6, %cst {dimension_numbers = #tpu.dot_dimension_numbers<[1], [0], [0], [1], [0, 0, 1, 1], [], []>} : vector<2x32xbf16>, vector<32x128xbf16>, vector<2x128xf32> -> vector<2x128xf32>
    %c0_6 = arith.constant 0 : index
    %c0_7 = arith.constant 0 : index
    %8 = vector.load %arg8[%c0_6, %c0_7] : memref<1x128xf32, #tpu.memory_space<vmem>>, vector<1x128xf32>
    %cst_8 = arith.constant dense<0.000000e+00> : vector<128xf32>
    %9 = vector.multi_reduction <add>, %7, %cst_8 [0] : vector<2x128xf32> to vector<128xf32>
    %10 = vector.shape_cast %9 : vector<128xf32> to vector<1x128xf32>
    %11 = arith.addf %8, %10 : vector<1x128xf32>
    %c0_9 = arith.constant 0 : index
    %c0_10 = arith.constant 0 : index
    %12 = vector.load %arg8[%c0_9, %c0_10] : memref<1x128xf32, #tpu.memory_space<vmem>>, vector<1x128xf32>
    tpu.vector_store %arg8[%c0_9, %c0_10], %11 {strides = array<i32>} : memref<1x128xf32, #tpu.memory_space<vmem>>, vector<1x128xf32>,
    %c0_11 = arith.constant 0 : index
    %c0_12 = arith.constant 0 : index
    %13 = vector.load %arg9[%c0_11, %c0_12] : memref<1x128xf32, #tpu.memory_space<vmem>>, vector<1x128xf32>
    %14 = arith.mulf %7, %7 : vector<2x128xf32>
    %cst_13 = arith.constant dense<0.000000e+00> : vector<128xf32>
    %15 = vector.multi_reduction <add>, %14, %cst_13 [0] : vector<2x128xf32> to vector<128xf32>
    %16 = vector.shape_cast %15 : vector<128xf32> to vector<1x128xf32>
    %17 = arith.addf %13, %16 : vector<1x128xf32>
    %c0_14 = arith.constant 0 : index
    %c0_15 = arith.constant 0 : index
    %18 = vector.load %arg9[%c0_14, %c0_15] : memref<1x128xf32, #tpu.memory_space<vmem>>, vector<1x128xf32>
    tpu.vector_store %arg9[%c0_14, %c0_15], %17 {strides = array<i32>} : memref<1x128xf32, #tpu.memory_space<vmem>>, vector<1x128xf32>,
    %c2_i32 = arith.constant 2 : i32
    %19 = arith.muli %arg2, %c2_i32 : i32
    %20 = tpu.assume_multiple %19, 2 : i32
    %21 = arith.truncf %7 : vector<2x128xf32> to vector<2x128xbf16>
    %c0_16 = arith.constant 0 : index
    %22 = arith.index_cast %20 : i32 to index
    %c0_17 = arith.constant 0 : index
    %23 = vector.load %arg7[%c0_16, %22, %c0_17] : memref<1x2x128xbf16, #tpu.memory_space<vmem>>, vector<1x2x128xbf16>
    %24 = vector.shape_cast %23 : vector<1x2x128xbf16> to vector<2x128xbf16>
    %25 = vector.shape_cast %21 : vector<2x128xbf16> to vector<1x2x128xbf16>
    tpu.vector_store %arg7[%c0_16, %22, %c0_17], %25 {strides = array<i32>} : memref<1x2x128xbf16, #tpu.memory_space<vmem>>, vector<1x2x128xbf16>,
    %c0_i32_18 = arith.constant 0 : i32
    %26 = arith.cmpi eq, %arg2, %c0_i32_18 : i32
    %27 = arith.extui %26 : i1 to i32
    %c0_i32_19 = arith.constant 0 : i32
    %28 = arith.cmpi ne, %27, %c0_i32_19 : i32
    scf.if %28 {
      %c0_20 = arith.constant 0 : index
      %c0_21 = arith.constant 0 : index
      %29 = vector.load %arg8[%c0_20, %c0_21] : memref<1x128xf32, #tpu.memory_space<vmem>>, vector<1x128xf32>
      %c0_22 = arith.constant 0 : index
      %c0_23 = arith.constant 0 : index
      %30 = vector.load %arg5[%c0_22, %c0_23] : memref<128x2xf32, #tpu.memory_space<vmem>>, vector<128x2xf32>
      %cst_24 = arith.constant dense<0.000000e+00> : vector<1x2xf32>
      %31 = tpu.matmul %29, %30, %cst_24 {dimension_numbers = #tpu.dot_dimension_numbers<[1], [0], [0], [1], [0, 0, 1, 1], [], []>} : vector<1x128xf32>, vector<128x2xf32>, vector<1x2xf32> -> vector<1x2xf32>
      %c0_25 = arith.constant 0 : index
      %c0_26 = arith.constant 0 : index
      %32 = vector.load %arg9[%c0_25, %c0_26] : memref<1x128xf32, #tpu.memory_space<vmem>>, vector<1x128xf32>
      %c0_27 = arith.constant 0 : index
      %c0_28 = arith.constant 0 : index
      %33 = vector.load %arg5[%c0_27, %c0_28] : memref<128x2xf32, #tpu.memory_space<vmem>>, vector<128x2xf32>
      %cst_29 = arith.constant dense<0.000000e+00> : vector<1x2xf32>
      %34 = tpu.matmul %32, %33, %cst_29 {dimension_numbers = #tpu.dot_dimension_numbers<[1], [0], [0], [1], [0, 0, 1, 1], [], []>} : vector<1x128xf32>, vector<128x2xf32>, vector<1x2xf32> -> vector<1x2xf32>
      %c0_30 = arith.constant 0 : index
      %c0_31 = arith.constant 0 : index
      %35 = vector.load %arg6[%c0_30, %c0_31] : memref<2x128xf32, #tpu.memory_space<vmem>>, vector<2x128xf32>
      %cst_32 = arith.constant dense<0.000000e+00> : vector<1x128xf32>
      %36 = tpu.matmul %31, %35, %cst_32 {dimension_numbers = #tpu.dot_dimension_numbers<[1], [0], [0], [1], [0, 0, 1, 1], [], []>} : vector<1x2xf32>, vector<2x128xf32>, vector<1x128xf32> -> vector<1x128xf32>
      %cst_33 = arith.constant 3.125000e-02 : f32
      %37 = vector.broadcast %cst_33 : f32 to vector<1x128xf32>
      %38 = arith.mulf %36, %37 : vector<1x128xf32>
      %c0_34 = arith.constant 0 : index
      %c0_35 = arith.constant 0 : index
      %39 = vector.load %arg6[%c0_34, %c0_35] : memref<2x128xf32, #tpu.memory_space<vmem>>, vector<2x128xf32>
      %cst_36 = arith.constant dense<0.000000e+00> : vector<1x128xf32>
      %40 = tpu.matmul %34, %39, %cst_36 {dimension_numbers = #tpu.dot_dimension_numbers<[1], [0], [0], [1], [0, 0, 1, 1], [], []>} : vector<1x2xf32>, vector<2x128xf32>, vector<1x128xf32> -> vector<1x128xf32>
      %cst_37 = arith.constant 3.125000e-02 : f32
      %41 = vector.broadcast %cst_37 : f32 to vector<1x128xf32>
      %42 = arith.mulf %40, %41 : vector<1x128xf32>
      %43 = arith.mulf %38, %38 : vector<1x128xf32>
      %44 = arith.subf %42, %43 : vector<1x128xf32>
      %cst_38 = arith.constant 0.000000e+00 : f32
      %45 = vector.broadcast %cst_38 : f32 to vector<1x128xf32>
      %46 = arith.maximumf %44, %45 : vector<1x128xf32>
      %cst_39 = arith.constant 9.99999974E-6 : f32
      %47 = vector.broadcast %cst_39 : f32 to vector<1x128xf32>
      %48 = arith.addf %46, %47 : vector<1x128xf32>
      %49 = math.rsqrt %48 : vector<1x128xf32>
      %c0_40 = arith.constant 0 : index
      %c0_41 = arith.constant 0 : index
      %c0_42 = arith.constant 0 : index
      %50 = vector.load %arg7[%c0_40, %c0_41, %c0_42] : memref<1x2x128xbf16, #tpu.memory_space<vmem>>, vector<1x2x128xbf16>
      %51 = vector.shape_cast %50 : vector<1x2x128xbf16> to vector<2x128xbf16>
      %52 = arith.extf %51 : vector<2x128xbf16> to vector<2x128xf32>
      %53 = vector.broadcast %38 : vector<1x128xf32> to vector<2x128xf32>
      %54 = arith.subf %52, %53 : vector<2x128xf32>
      %55 = vector.broadcast %49 : vector<1x128xf32> to vector<2x128xf32>
      %56 = arith.mulf %54, %55 : vector<2x128xf32>
      %cst_43 = arith.constant 0.000000e+00 : f32
      %57 = vector.broadcast %cst_43 : f32 to vector<2x128xf32>
      %58 = arith.cmpf oge, %56, %57 : vector<2x128xf32>
      %cst_44 = arith.constant 2.000000e-01 : f32
      %59 = vector.broadcast %cst_44 : f32 to vector<2x128xf32>
      %60 = arith.mulf %59, %56 : vector<2x128xf32>
      %61 = arith.select %58, %56, %60 : vector<2x128xi1>, vector<2x128xf32>
      %62 = arith.truncf %61 : vector<2x128xf32> to vector<2x128xbf16>
      %c0_45 = arith.constant 0 : index
      %c0_46 = arith.constant 0 : index
      %c0_47 = arith.constant 0 : index
      %63 = vector.load %arg7[%c0_45, %c0_46, %c0_47] : memref<1x2x128xbf16, #tpu.memory_space<vmem>>, vector<1x2x128xbf16>
      %64 = vector.shape_cast %63 : vector<1x2x128xbf16> to vector<2x128xbf16>
      %65 = vector.shape_cast %62 : vector<2x128xbf16> to vector<1x2x128xbf16>
      tpu.vector_store %arg7[%c0_45, %c0_46, %c0_47], %65 {strides = array<i32>} : memref<1x2x128xbf16, #tpu.memory_space<vmem>>, vector<1x2x128xbf16>,
    } else {
    }
    return
  }
  func.func @transform_0(%arg0: i32, %arg1: i32, %arg2: i32) -> (i32, i32, i32) {
    %c0_i32 = arith.constant 0 : i32
    %c0_i32_0 = arith.constant 0 : i32
    return %arg0, %arg2, %c0_i32 : i32, i32, i32
  }
  func.func @transform_1(%arg0: i32, %arg1: i32, %arg2: i32) -> (i32, i32, i32) {
    %c0_i32 = arith.constant 0 : i32
    %c0_i32_0 = arith.constant 0 : i32
    return %arg0, %c0_i32, %arg1 : i32, i32, i32
  }
  func.func @transform_2(%arg0: i32, %arg1: i32, %arg2: i32) -> (i32, i32) {
    %c0_i32 = arith.constant 0 : i32
    %c0_i32_0 = arith.constant 0 : i32
    return %arg1, %c0_i32 : i32, i32
  }
  func.func @transform_3(%arg0: i32, %arg1: i32, %arg2: i32) -> (i32, i32) {
    %c0_i32 = arith.constant 0 : i32
    %c0_i32_0 = arith.constant 0 : i32
    return %c0_i32, %arg1 : i32, i32
  }
  func.func @transform_4(%arg0: i32, %arg1: i32, %arg2: i32) -> (i32, i32, i32) {
    %c0_i32 = arith.constant 0 : i32
    %c0_i32_0 = arith.constant 0 : i32
    return %arg0, %c0_i32, %arg1 : i32, i32, i32
  }
}

module attributes {stable_mosaic.version = 11 : i64} {
  func.func @_matmul_bn_lrelu_kernel(%arg0: i32, %arg1: i32, %arg2: i32, %arg3: memref<1x32x32xbf16, #tpu.memory_space<vmem>>, %arg4: memref<1x32x128xbf16, #tpu.memory_space<vmem>>, %arg5: memref<128x1xf32, #tpu.memory_space<vmem>>, %arg6: memref<1x128xf32, #tpu.memory_space<vmem>>, %arg7: memref<1x32x128xbf16, #tpu.memory_space<vmem>>, %arg8: memref<1x128xf32, #tpu.memory_space<vmem>>, %arg9: memref<1x128xf32, #tpu.memory_space<vmem>>) attributes {dimension_semantics = [#tpu.dimension_semantics<parallel>, #tpu.dimension_semantics<parallel>, #tpu.dimension_semantics<arbitrary>], iteration_bounds = array<i64: 1, 1, 1>, scalar_prefetch = 0 : i64, scratch_operands = 2 : i64, tpu.core_type = #tpu.core_type<tc>, window_params = [{transform_indices = @transform_0, window_bounds = array<i64: 1, 32, 32>}, {transform_indices = @transform_1, window_bounds = array<i64: 1, 32, 128>}, {transform_indices = @transform_2, window_bounds = array<i64: 128, 1>}, {transform_indices = @transform_3, window_bounds = array<i64: 1, 128>}, {transform_indices = @transform_4, window_bounds = array<i64: 1, 32, 128>}]} {
    %c0_i32 = arith.constant 0 : i32
    %0 = arith.cmpi eq, %arg2, %c0_i32 : i32
    %1 = arith.extui %0 : i1 to i32
    %c0_i32_0 = arith.constant 0 : i32
    %2 = arith.cmpi ne, %1, %c0_i32_0 : i32
    scf.if %2 {
      %cst_20 = arith.constant 0.000000e+00 : f32
      %29 = vector.broadcast %cst_20 : f32 to vector<1x128xf32>
      %c0_21 = arith.constant 0 : index
      %c0_22 = arith.constant 0 : index
      %30 = vector.load %arg8[%c0_21, %c0_22] : memref<1x128xf32, #tpu.memory_space<vmem>>, vector<1x128xf32>
      tpu.vector_store %arg8[%c0_21, %c0_22], %29 {strides = array<i32>} : memref<1x128xf32, #tpu.memory_space<vmem>>, vector<1x128xf32>,
      %cst_23 = arith.constant 0.000000e+00 : f32
      %31 = vector.broadcast %cst_23 : f32 to vector<1x128xf32>
      %c0_24 = arith.constant 0 : index
      %c0_25 = arith.constant 0 : index
      %32 = vector.load %arg9[%c0_24, %c0_25] : memref<1x128xf32, #tpu.memory_space<vmem>>, vector<1x128xf32>
      tpu.vector_store %arg9[%c0_24, %c0_25], %31 {strides = array<i32>} : memref<1x128xf32, #tpu.memory_space<vmem>>, vector<1x128xf32>,
    } else {
    }
    %c0 = arith.constant 0 : index
    %c0_1 = arith.constant 0 : index
    %c0_2 = arith.constant 0 : index
    %3 = vector.load %arg3[%c0, %c0_1, %c0_2] : memref<1x32x32xbf16, #tpu.memory_space<vmem>>, vector<1x32x32xbf16>
    %4 = vector.shape_cast %3 : vector<1x32x32xbf16> to vector<32x32xbf16>
    %c0_3 = arith.constant 0 : index
    %c0_4 = arith.constant 0 : index
    %c0_5 = arith.constant 0 : index
    %5 = vector.load %arg4[%c0_3, %c0_4, %c0_5] : memref<1x32x128xbf16, #tpu.memory_space<vmem>>, vector<1x32x128xbf16>
    %6 = vector.shape_cast %5 : vector<1x32x128xbf16> to vector<32x128xbf16>
    %cst = arith.constant dense<0.000000e+00> : vector<32x128xf32>
    %7 = tpu.matmul %4, %6, %cst {dimension_numbers = #tpu.dot_dimension_numbers<[1], [0], [0], [1], [0, 0, 1, 1], [], []>} : vector<32x32xbf16>, vector<32x128xbf16>, vector<32x128xf32> -> vector<32x128xf32>
    %c0_6 = arith.constant 0 : index
    %c0_7 = arith.constant 0 : index
    %8 = vector.load %arg8[%c0_6, %c0_7] : memref<1x128xf32, #tpu.memory_space<vmem>>, vector<1x128xf32>
    %cst_8 = arith.constant dense<0.000000e+00> : vector<128xf32>
    %9 = vector.multi_reduction <add>, %7, %cst_8 [0] : vector<32x128xf32> to vector<128xf32>
    %10 = vector.shape_cast %9 : vector<128xf32> to vector<1x128xf32>
    %11 = arith.addf %8, %10 : vector<1x128xf32>
    %c0_9 = arith.constant 0 : index
    %c0_10 = arith.constant 0 : index
    %12 = vector.load %arg8[%c0_9, %c0_10] : memref<1x128xf32, #tpu.memory_space<vmem>>, vector<1x128xf32>
    tpu.vector_store %arg8[%c0_9, %c0_10], %11 {strides = array<i32>} : memref<1x128xf32, #tpu.memory_space<vmem>>, vector<1x128xf32>,
    %c0_11 = arith.constant 0 : index
    %c0_12 = arith.constant 0 : index
    %13 = vector.load %arg9[%c0_11, %c0_12] : memref<1x128xf32, #tpu.memory_space<vmem>>, vector<1x128xf32>
    %14 = arith.mulf %7, %7 : vector<32x128xf32>
    %cst_13 = arith.constant dense<0.000000e+00> : vector<128xf32>
    %15 = vector.multi_reduction <add>, %14, %cst_13 [0] : vector<32x128xf32> to vector<128xf32>
    %16 = vector.shape_cast %15 : vector<128xf32> to vector<1x128xf32>
    %17 = arith.addf %13, %16 : vector<1x128xf32>
    %c0_14 = arith.constant 0 : index
    %c0_15 = arith.constant 0 : index
    %18 = vector.load %arg9[%c0_14, %c0_15] : memref<1x128xf32, #tpu.memory_space<vmem>>, vector<1x128xf32>
    tpu.vector_store %arg9[%c0_14, %c0_15], %17 {strides = array<i32>} : memref<1x128xf32, #tpu.memory_space<vmem>>, vector<1x128xf32>,
    %c32_i32 = arith.constant 32 : i32
    %19 = arith.muli %arg2, %c32_i32 : i32
    %20 = tpu.assume_multiple %19, 32 : i32
    %21 = arith.truncf %7 : vector<32x128xf32> to vector<32x128xbf16>
    %c0_16 = arith.constant 0 : index
    %22 = arith.index_cast %20 : i32 to index
    %c0_17 = arith.constant 0 : index
    %23 = vector.load %arg7[%c0_16, %22, %c0_17] : memref<1x32x128xbf16, #tpu.memory_space<vmem>>, vector<1x32x128xbf16>
    %24 = vector.shape_cast %23 : vector<1x32x128xbf16> to vector<32x128xbf16>
    %25 = vector.shape_cast %21 : vector<32x128xbf16> to vector<1x32x128xbf16>
    tpu.vector_store %arg7[%c0_16, %22, %c0_17], %25 {strides = array<i32>} : memref<1x32x128xbf16, #tpu.memory_space<vmem>>, vector<1x32x128xbf16>,
    %c0_i32_18 = arith.constant 0 : i32
    %26 = arith.cmpi eq, %arg2, %c0_i32_18 : i32
    %27 = arith.extui %26 : i1 to i32
    %c0_i32_19 = arith.constant 0 : i32
    %28 = arith.cmpi ne, %27, %c0_i32_19 : i32
    scf.if %28 {
      %c0_20 = arith.constant 0 : index
      %c0_21 = arith.constant 0 : index
      %29 = vector.load %arg8[%c0_20, %c0_21] : memref<1x128xf32, #tpu.memory_space<vmem>>, vector<1x128xf32>
      %c0_22 = arith.constant 0 : index
      %c0_23 = arith.constant 0 : index
      %30 = vector.load %arg5[%c0_22, %c0_23] : memref<128x1xf32, #tpu.memory_space<vmem>>, vector<128x1xf32>
      %cst_24 = arith.constant dense<0.000000e+00> : vector<1x1xf32>
      %31 = tpu.matmul %29, %30, %cst_24 {dimension_numbers = #tpu.dot_dimension_numbers<[1], [0], [0], [1], [0, 0, 1, 1], [], []>} : vector<1x128xf32>, vector<128x1xf32>, vector<1x1xf32> -> vector<1x1xf32>
      %c0_25 = arith.constant 0 : index
      %c0_26 = arith.constant 0 : index
      %32 = vector.load %arg9[%c0_25, %c0_26] : memref<1x128xf32, #tpu.memory_space<vmem>>, vector<1x128xf32>
      %c0_27 = arith.constant 0 : index
      %c0_28 = arith.constant 0 : index
      %33 = vector.load %arg5[%c0_27, %c0_28] : memref<128x1xf32, #tpu.memory_space<vmem>>, vector<128x1xf32>
      %cst_29 = arith.constant dense<0.000000e+00> : vector<1x1xf32>
      %34 = tpu.matmul %32, %33, %cst_29 {dimension_numbers = #tpu.dot_dimension_numbers<[1], [0], [0], [1], [0, 0, 1, 1], [], []>} : vector<1x128xf32>, vector<128x1xf32>, vector<1x1xf32> -> vector<1x1xf32>
      %c0_30 = arith.constant 0 : index
      %c0_31 = arith.constant 0 : index
      %35 = vector.load %arg6[%c0_30, %c0_31] : memref<1x128xf32, #tpu.memory_space<vmem>>, vector<1x128xf32>
      %cst_32 = arith.constant dense<0.000000e+00> : vector<1x128xf32>
      %36 = tpu.matmul %31, %35, %cst_32 {dimension_numbers = #tpu.dot_dimension_numbers<[1], [0], [0], [1], [0, 0, 1, 1], [], []>} : vector<1x1xf32>, vector<1x128xf32>, vector<1x128xf32> -> vector<1x128xf32>
      %cst_33 = arith.constant 7.812500e-03 : f32
      %37 = vector.broadcast %cst_33 : f32 to vector<1x128xf32>
      %38 = arith.mulf %36, %37 : vector<1x128xf32>
      %c0_34 = arith.constant 0 : index
      %c0_35 = arith.constant 0 : index
      %39 = vector.load %arg6[%c0_34, %c0_35] : memref<1x128xf32, #tpu.memory_space<vmem>>, vector<1x128xf32>
      %cst_36 = arith.constant dense<0.000000e+00> : vector<1x128xf32>
      %40 = tpu.matmul %34, %39, %cst_36 {dimension_numbers = #tpu.dot_dimension_numbers<[1], [0], [0], [1], [0, 0, 1, 1], [], []>} : vector<1x1xf32>, vector<1x128xf32>, vector<1x128xf32> -> vector<1x128xf32>
      %cst_37 = arith.constant 7.812500e-03 : f32
      %41 = vector.broadcast %cst_37 : f32 to vector<1x128xf32>
      %42 = arith.mulf %40, %41 : vector<1x128xf32>
      %43 = arith.mulf %38, %38 : vector<1x128xf32>
      %44 = arith.subf %42, %43 : vector<1x128xf32>
      %cst_38 = arith.constant 0.000000e+00 : f32
      %45 = vector.broadcast %cst_38 : f32 to vector<1x128xf32>
      %46 = arith.maximumf %44, %45 : vector<1x128xf32>
      %cst_39 = arith.constant 9.99999974E-6 : f32
      %47 = vector.broadcast %cst_39 : f32 to vector<1x128xf32>
      %48 = arith.addf %46, %47 : vector<1x128xf32>
      %49 = math.rsqrt %48 : vector<1x128xf32>
      %c0_40 = arith.constant 0 : index
      %c0_41 = arith.constant 0 : index
      %c0_42 = arith.constant 0 : index
      %50 = vector.load %arg7[%c0_40, %c0_41, %c0_42] : memref<1x32x128xbf16, #tpu.memory_space<vmem>>, vector<1x32x128xbf16>
      %51 = vector.shape_cast %50 : vector<1x32x128xbf16> to vector<32x128xbf16>
      %52 = arith.extf %51 : vector<32x128xbf16> to vector<32x128xf32>
      %53 = vector.broadcast %38 : vector<1x128xf32> to vector<32x128xf32>
      %54 = arith.subf %52, %53 : vector<32x128xf32>
      %55 = vector.broadcast %49 : vector<1x128xf32> to vector<32x128xf32>
      %56 = arith.mulf %54, %55 : vector<32x128xf32>
      %cst_43 = arith.constant 0.000000e+00 : f32
      %57 = vector.broadcast %cst_43 : f32 to vector<32x128xf32>
      %58 = arith.cmpf oge, %56, %57 : vector<32x128xf32>
      %cst_44 = arith.constant 2.000000e-01 : f32
      %59 = vector.broadcast %cst_44 : f32 to vector<32x128xf32>
      %60 = arith.mulf %59, %56 : vector<32x128xf32>
      %61 = arith.select %58, %56, %60 : vector<32x128xi1>, vector<32x128xf32>
      %62 = arith.truncf %61 : vector<32x128xf32> to vector<32x128xbf16>
      %c0_45 = arith.constant 0 : index
      %c0_46 = arith.constant 0 : index
      %c0_47 = arith.constant 0 : index
      %63 = vector.load %arg7[%c0_45, %c0_46, %c0_47] : memref<1x32x128xbf16, #tpu.memory_space<vmem>>, vector<1x32x128xbf16>
      %64 = vector.shape_cast %63 : vector<1x32x128xbf16> to vector<32x128xbf16>
      %65 = vector.shape_cast %62 : vector<32x128xbf16> to vector<1x32x128xbf16>
      tpu.vector_store %arg7[%c0_45, %c0_46, %c0_47], %65 {strides = array<i32>} : memref<1x32x128xbf16, #tpu.memory_space<vmem>>, vector<1x32x128xbf16>,
    } else {
    }
    return
  }
  func.func @transform_0(%arg0: i32, %arg1: i32, %arg2: i32) -> (i32, i32, i32) {
    %c0_i32 = arith.constant 0 : i32
    %c0_i32_0 = arith.constant 0 : i32
    return %arg0, %arg2, %c0_i32 : i32, i32, i32
  }
  func.func @transform_1(%arg0: i32, %arg1: i32, %arg2: i32) -> (i32, i32, i32) {
    %c0_i32 = arith.constant 0 : i32
    %c0_i32_0 = arith.constant 0 : i32
    return %arg0, %c0_i32, %arg1 : i32, i32, i32
  }
  func.func @transform_2(%arg0: i32, %arg1: i32, %arg2: i32) -> (i32, i32) {
    %c0_i32 = arith.constant 0 : i32
    %c0_i32_0 = arith.constant 0 : i32
    return %arg1, %c0_i32 : i32, i32
  }
  func.func @transform_3(%arg0: i32, %arg1: i32, %arg2: i32) -> (i32, i32) {
    %c0_i32 = arith.constant 0 : i32
    %c0_i32_0 = arith.constant 0 : i32
    return %c0_i32, %arg1 : i32, i32
  }
  func.func @transform_4(%arg0: i32, %arg1: i32, %arg2: i32) -> (i32, i32, i32) {
    %c0_i32 = arith.constant 0 : i32
    %c0_i32_0 = arith.constant 0 : i32
    return %arg0, %c0_i32, %arg1 : i32, i32, i32
  }
}

module attributes {stable_mosaic.version = 11 : i64} {
  func.func @_matmul_tanh_kernel(%arg0: i32, %arg1: i32, %arg2: i32, %arg3: memref<1x128x16xbf16, #tpu.memory_space<vmem>>, %arg4: memref<1x16x128xbf16, #tpu.memory_space<vmem>>, %arg5: memref<1x128x128xf32, #tpu.memory_space<vmem>>) attributes {dimension_semantics = [#tpu.dimension_semantics<parallel>, #tpu.dimension_semantics<parallel>, #tpu.dimension_semantics<parallel>], iteration_bounds = array<i64: 1, 1, 1>, scalar_prefetch = 0 : i64, scratch_operands = 0 : i64, tpu.core_type = #tpu.core_type<tc>, window_params = [{transform_indices = @transform_0, window_bounds = array<i64: 1, 128, 16>}, {transform_indices = @transform_1, window_bounds = array<i64: 1, 16, 128>}, {transform_indices = @transform_2, window_bounds = array<i64: 1, 128, 128>}]} {
    %c0 = arith.constant 0 : index
    %c0_0 = arith.constant 0 : index
    %c0_1 = arith.constant 0 : index
    %0 = vector.load %arg3[%c0, %c0_0, %c0_1] : memref<1x128x16xbf16, #tpu.memory_space<vmem>>, vector<1x128x16xbf16>
    %1 = vector.shape_cast %0 : vector<1x128x16xbf16> to vector<128x16xbf16>
    %c0_2 = arith.constant 0 : index
    %c0_3 = arith.constant 0 : index
    %c0_4 = arith.constant 0 : index
    %2 = vector.load %arg4[%c0_2, %c0_3, %c0_4] : memref<1x16x128xbf16, #tpu.memory_space<vmem>>, vector<1x16x128xbf16>
    %3 = vector.shape_cast %2 : vector<1x16x128xbf16> to vector<16x128xbf16>
    %cst = arith.constant dense<0.000000e+00> : vector<128x128xf32>
    %4 = tpu.matmul %1, %3, %cst {dimension_numbers = #tpu.dot_dimension_numbers<[1], [0], [0], [1], [0, 0, 1, 1], [], []>} : vector<128x16xbf16>, vector<16x128xbf16>, vector<128x128xf32> -> vector<128x128xf32>
    %5 = math.tanh %4 : vector<128x128xf32>
    %c0_5 = arith.constant 0 : index
    %c0_6 = arith.constant 0 : index
    %c0_7 = arith.constant 0 : index
    %6 = vector.load %arg5[%c0_5, %c0_6, %c0_7] : memref<1x128x128xf32, #tpu.memory_space<vmem>>, vector<1x128x128xf32>
    %7 = vector.shape_cast %6 : vector<1x128x128xf32> to vector<128x128xf32>
    %8 = vector.shape_cast %5 : vector<128x128xf32> to vector<1x128x128xf32>
    tpu.vector_store %arg5[%c0_5, %c0_6, %c0_7], %8 {strides = array<i32>} : memref<1x128x128xf32, #tpu.memory_space<vmem>>, vector<1x128x128xf32>,
    return
  }
  func.func @transform_0(%arg0: i32, %arg1: i32, %arg2: i32) -> (i32, i32, i32) {
    %c0_i32 = arith.constant 0 : i32
    %c0_i32_0 = arith.constant 0 : i32
    return %arg0, %arg2, %c0_i32 : i32, i32, i32
  }
  func.func @transform_1(%arg0: i32, %arg1: i32, %arg2: i32) -> (i32, i32, i32) {
    %c0_i32 = arith.constant 0 : i32
    %c0_i32_0 = arith.constant 0 : i32
    return %arg0, %c0_i32, %arg1 : i32, i32, i32
  }
  func.func @transform_2(%arg0: i32, %arg1: i32, %arg2: i32) -> (i32, i32, i32) {
    %c0_i32 = arith.constant 0 : i32
    return %arg0, %arg2, %arg1 : i32, i32, i32
  }
}

</mosaic_0001>

<bundles_post_ra>
// kernel: squeeze.1
= control target key start
LH: loop header
LB: loop body
LE: loop exit
PB: predicated region body
PF: predicated region fallthrough
CT: control target
= control target key end

     0   :  { %s101_s8 = smov 116   ;;  %s102_s9 = smov 108   ;;  %vm18_vm0 = vcmask 31744   ;;  %s140_s0 = inlined_call_operand.vmem [shape: bf16[1,2,32], index: 0, kind: input, shape index: {}]   ;;  %s141_s1 = inlined_call_operand.vmem [shape: bf16[2,1,2,4,4], index: 1, kind: output, shape index: {}]  }
   0x1   :  { %v13_v0 = vld [vmem:[%s140_s0] sm:$0x1]  ;;  %s100_s0 = smov 124   ;;  %s103_s10 = smov 120  }
   0x2   :  { %v14_v1 = vunpack.c.l.bf16 %v13_v0  ;;  %s104_s11 = smov 112   ;;  %s105_s12 = smov 104  }
   0x3   :  { %s106_s13 = smov 100  }
   0x4   :  { %16 = vst [vmem:[#allocation1] sm:$0x3] %v14_v1 }
   0xb   :  { %v20_v2 = vld [vmem:[#allocation1] sm:$0x3]  }
   0xc   :  { %v32_v3 = vld [vmem:[#allocation1] sm:$0x3]   ;;  %21 = vrot.lane.b32.xlu0 %v20_v2, %s100_s0 }
   0xd   :  { %33 = vrot.lane.b32.xlu1 %v32_v3, %s101_s8  ;;  %v44_v4 = vld [vmem:[#allocation1] sm:$0x3]  }
   0xe   :  { %45 = vrot.lane.b32.xlu2 %v44_v4, %s102_s9  ;;  %v26_v5 = vld [vmem:[#allocation1] sm:$0x3]  }
   0xf   :  { %v38_v6 = vld [vmem:[#allocation1] sm:$0x3]  }
  0x10   :  { %v50_v7 = vld [vmem:[#allocation1] sm:$0x3]  }
  0x11   :  { %v56_v8 = vld [vmem:[#allocation1] sm:$0x3]  }
  0x12   :  { %v17_v9 = vld [vmem:[#allocation1] sm:$0x3]  }
  0x13   :  { %19 = vst.msk [vmem:[#allocation0] ss:$16 sm:$0x3] %vm18_vm0, %v17_v9  }
  0x14   :  { %27 = vrot.lane.b32.xlu0 %v26_v5, %s103_s10 }
  0x15   :  { %39 = vrot.lane.b32.xlu1 %v38_v6, %s104_s11 }
  0x16   :  { %51 = vrot.lane.b32.xlu2 %v50_v7, %s105_s12 }
  0x1c   :  { %57 = vrot.lane.b32.xlu0 %v56_v8, %s106_s13 }
  0x68   :  { %v46_v10 = vpop.permute.xlu2 %45  }
  0x69   :  { %49 = vst.msk [vmem:[#allocation0 + $0x9] ss:$16 sm:$0x3] %vm18_vm0, %v46_v10  }
  0x70   :  { %v52_v11 = vpop.permute.xlu2 %51  }
  0x71   :  { %55 = vst.msk [vmem:[#allocation0 + $0xa] ss:$16 sm:$0x3] %vm18_vm0, %v52_v11  }
  0x7e   :  { %v22_v12 = vpop.permute.xlu0 %21  }
  0x7f   :  { %v34_v13 = vpop.permute.xlu1 %33   ;;  %25 = vst.msk [vmem:[#allocation0 + $0x1] ss:$16 sm:$0x3] %vm18_vm0, %v22_v12  }
  0x80   :  { %37 = vst.msk [vmem:[#allocation0 + $0x3] ss:$16 sm:$0x3] %vm18_vm0, %v34_v13  }
  0x86   :  { %v28_v14 = vpop.permute.xlu0 %27  }
  0x87   :  { %v40_v15 = vpop.permute.xlu1 %39   ;;  %31 = vst.msk [vmem:[#allocation0 + $0x2] ss:$16 sm:$0x3] %vm18_vm0, %v28_v14  }
  0x88   :  { %43 = vst.msk [vmem:[#allocation0 + $0x8] ss:$16 sm:$0x3] %vm18_vm0, %v40_v15  }
  0x8e   :  { %v64_v16 = vld [vmem:[#allocation0] sm:$0xf]  ;;  %v77_v17 = vld [vmem:[#allocation0 + $0x10] sm:$0xf]  ;;  %v58_v18 = vpop.permute.xlu0 %57  }
  0x8f   :  { %v65_v19 = vpack.c.bf16 0.0, %v64_v16  ;;  %v78_v20 = vpack.c.bf16 0.0, %v77_v17  ;;  %61 = vst.msk [vmem:[#allocation0 + $0xb] ss:$16 sm:$0x3] %vm18_vm0, %v58_v18  }
  0x91   :  { %68 = vst [vmem:[%s141_s1] sm:$0x3] %v65_v19 }
  0x92   :  { %91 = vst [vmem:[%s141_s1 + $0x4] sm:$0x3] %v78_v20 }
  0x96   :  { %v70_v21 = vld [vmem:[#allocation0 + $0x8] sm:$0xf]  ;;  %v84_v22 = vld [vmem:[#allocation0 + $0x18] sm:$0xf] }
  0x97   :  { %v71_v23 = vpack.c.bf16 0.0, %v70_v21  ;;  %v85_v24 = vpack.c.bf16 0.0, %v84_v22 }
  0x99   :  { %90 = vst [vmem:[%s141_s1 + $0x2] sm:$0x3] %v71_v23 }
  0x9a   :  { %92 = vst [vmem:[%s141_s1 + $0x6] sm:$0x3] %v85_v24 }

// kernel: gen_conv_forward.3
= control target key start
LH: loop header
LB: loop body
LE: loop exit
PB: predicated region body
PF: predicated region fallthrough
CT: control target
= control target key end

     0   :  { %v248_v1 = vmov 0.0   ;;  %vm41_vm0 = vcmask 261120   ;;  %vm59_vm1 = vcmask 1041408   ;;  %vm148_vm2 = vcmask 15360   ;;  %s347_s1 = inlined_call_operand.vmem [shape: bf16[1,32,128], index: 1, kind: input, shape index: {}]   ;;  %s348_s2 = inlined_call_operand.vmem [shape: f32[128,2], index: 2, kind: input, shape index: {}]   ;;  %s349_s0 = inlined_call_operand.vmem [shape: bf16[1,2,32], index: 0, kind: input, shape index: {}]   ;;  %s350_s4 = inlined_call_operand.vmem [shape: bf16[1,2,128], index: 4, kind: output, shape index: {}]   ;;  %s351_s3 = inlined_call_operand.vmem [shape: f32[2,128], index: 3, kind: input, shape index: {}]  }
   0x1   :  { %v244_v0 = vld [vmem:[%s347_s1 + $0x8] sm:$0xff]  ;;  %22 = vst [vmem:[#allocation2] sm:$0x1] %v248_v1  ;;  %v105_v2 = vld [vmem:[%s348_s2 + $0x78] sm:$0xff]  ;;  %v104_v3 = vld [vmem:[%s348_s2 + $0x70] sm:$0xff] }
   0x2   :  { %23 = vst [vmem:[#allocation3] sm:$0x1] %v248_v1  ;;  %51 = vmatpush.bf16.msra.mxu0 %v244_v0  ;;  %v243_v4 = vld [vmem:[%s347_s1] sm:$0xff]  ;;  %106 = vmatpush.msra.mxu1 %v105_v2  ;;  %v103_v5 = vld [vmem:[%s348_s2 + $0x68] sm:$0xff]  ;;  %v101_v8 = vld [vmem:[%s348_s2 + $0x58] sm:$0xff] }
   0x3   :  { %127 = vmatpush.msra.mxu2 %v105_v2  ;;  %v102_v6 = vld [vmem:[%s348_s2 + $0x60] sm:$0xff]  ;;  %v100_v9 = vld [vmem:[%s348_s2 + $0x50] sm:$0xff]  ;;  %v99_v10 = vld [vmem:[%s348_s2 + $0x48] sm:$0xff] }
   0x4   :  { %107 = vmatpush.msra.mxu1 %v104_v3  ;;  %v24_v7 = vld [vmem:[%s349_s0] sm:$0x1]  ;;  %v97_v12 = vld [vmem:[%s348_s2 + $0x38] sm:$0xff]  ;;  %v96_v13 = vld [vmem:[%s348_s2 + $0x30] sm:$0xff] }
   0x5   :  { %128 = vmatpush.msra.mxu2 %v104_v3  ;;  %v98_v11 = vld [vmem:[%s348_s2 + $0x40] sm:$0xff]  ;;  %v95_v14 = vld [vmem:[%s348_s2 + $0x28] sm:$0xff]  ;;  %v93_v16 = vld [vmem:[%s348_s2 + $0x18] sm:$0xff] }
   0x6   :  { %52 = vmatpush.bf16.msra.mxu0 %v243_v4  ;;  %108 = vmatpush.msra.mxu1 %v103_v5  ;;  %v94_v15 = vld [vmem:[%s348_s2 + $0x20] sm:$0xff]  ;;  %v92_v17 = vld [vmem:[%s348_s2 + $0x10] sm:$0xff]  ;;  %v91_v18 = vld [vmem:[%s348_s2 + $0x8] sm:$0xff] }
   0x7   :  { %129 = vmatpush.msra.mxu2 %v103_v5  ;;  %v90_v19 = vld [vmem:[%s348_s2] sm:$0xff] }
   0x8   :  { %109 = vmatpush.msra.mxu1 %v102_v6  ;;  %v58_v35 = vld [vmem:[#allocation2] sm:$0x1] }
   0x9   :  { %238 = vmatmul.msk.bf16.vlgmr.msra.gmra.mxu0 %vm41_vm0, %v24_v7  ;;  %130 = vmatpush.msra.mxu2 %v102_v6  ;;  %v69_v38 = vld [vmem:[#allocation3] sm:$0x1] }
   0xa   :  { %110 = vmatpush.msra.mxu1 %v101_v8  ;;  %v147_v44 = vld [vmem:[%s351_s3] sm:$0x3] }
   0xb   :  { %131 = vmatpush.msra.mxu2 %v101_v8  ;;  %239 = vmatpush.msk.msra.mxu3 %vm59_vm1, %v147_v44 }
   0xc   :  { %111 = vmatpush.msra.mxu1 %v100_v9 }
   0xd   :  { %132 = vmatpush.msra.mxu2 %v100_v9  ;;  %241 = vmatpush.msk.msrb.mxu3 %vm59_vm1, %v147_v44 }
   0xe   :  { %112 = vmatpush.msra.mxu1 %v99_v10 }
   0xf   :  { %133 = vmatpush.msra.mxu2 %v99_v10 }
  0x10   :  { %113 = vmatpush.msra.mxu1 %v98_v11 }
  0x11   :  { %134 = vmatpush.msra.mxu2 %v98_v11 }
  0x12   :  { %114 = vmatpush.msra.mxu1 %v97_v12 }
  0x13   :  { %135 = vmatpush.msra.mxu2 %v97_v12 }
  0x14   :  { %115 = vmatpush.msra.mxu1 %v96_v13 }
  0x15   :  { %136 = vmatpush.msra.mxu2 %v96_v13 }
  0x16   :  { %116 = vmatpush.msra.mxu1 %v95_v14 }
  0x17   :  { %137 = vmatpush.msra.mxu2 %v95_v14 }
  0x18   :  { %117 = vmatpush.msra.mxu1 %v94_v15 }
  0x19   :  { %138 = vmatpush.msra.mxu2 %v94_v15 }
  0x1a   :  { %118 = vmatpush.msra.mxu1 %v93_v16 }
  0x1b   :  { %139 = vmatpush.msra.mxu2 %v93_v16 }
  0x1c   :  { %119 = vmatpush.msra.mxu1 %v92_v17 }
  0x1d   :  { %140 = vmatpush.msra.mxu2 %v92_v17 }
  0x1e   :  { %120 = vmatpush.msra.mxu1 %v91_v18 }
  0x1f   :  { %141 = vmatpush.msra.mxu2 %v91_v18 }
  0x20   :  { %121 = vmatpush.msra.mxu1 %v90_v19 }
  0x21   :  { %142 = vmatpush.msra.mxu2 %v90_v19 }
  0x86   :  { %v54_v20 = vpop.f32.mrf.mxu0 }
  0x87   :  { %v60_v21 = vsel %vm59_vm1, %v54_v20, 0.0  ;;  %v70_v22 = vmul.f32 %v54_v20, %v54_v20  ;;  %v81_v23 = vpack.c.bf16 %v54_v20, %v54_v20 }
  0x88   :  { %v61_v24 = vrot.slane %v60_v21, 4 }
  0x89   :  { %v71_v25 = vsel %vm59_vm1, %v70_v22, 0.0  ;;  %85 = vst [vmem:[%s350_s4] sm:$0x1] %v81_v23 }
  0x8a   :  { %v62_v26 = vadd.f32 %v61_v24, %v60_v21  ;;  %v72_v27 = vrot.slane %v71_v25, 4 }
  0x8c   :  { %v63_v28 = vrot.slane %v62_v26, 2  ;;  %v73_v29 = vadd.f32 %v72_v27, %v71_v25 }
  0x8e   :  { %v64_v30 = vadd.f32 %v63_v28, %v62_v26  ;;  %v74_v31 = vrot.slane %v73_v29, 2  ;;  %v56_v32 = vpop.f32.mrf.mxu0 }
  0x90   :  { %v65_v33 = vrot.slane %v64_v30, 1  ;;  %v75_v34 = vadd.f32 %v74_v31, %v73_v29  ;;  %v214_v59 = vld [vmem:[%s350_s4] sm:$0x1] }
  0x91   :  { %v215_v63 = vunpack.c.l.bf16 %v214_v59 }
  0x92   :  { %v66_v36 = vadd.f32 %v65_v33, %v64_v30  ;;  %v76_v37 = vrot.slane %v75_v34, 1 }
  0x94   :  { %v67_v39 = vadd.f32 %v66_v36, %v58_v35  ;;  %v77_v40 = vadd.f32 %v76_v37, %v75_v34 }
  0x96   :  { %68 = vst [vmem:[#allocation2] sm:$0x1] %v67_v39  ;;  %v78_v41 = vadd.f32 %v77_v40, %v69_v38 }
  0x98   :  { %79 = vst [vmem:[#allocation3] sm:$0x1] %v78_v41 }
  0x9d   :  { %v89_v42 = vld [vmem:[#allocation2] sm:$0x1] }
  0x9e   :  { %122 = vmatmul.f32.vlgmr.msra.gmra.mxu1 %v89_v42 }
  0x9f   :  { %v126_v43 = vld [vmem:[#allocation3] sm:$0x1] }
  0xa0   :  { %143 = vmatmul.f32.vlgmr.msra.gmra.mxu2 %v126_v43 }
 0x11b   :  { %v123_v45 = vpop.f32.mrf.mxu1 }
 0x11c   :  { %240 = vmatmul.msk.f32.vlgmr.msra.gmra.mxu3 %vm148_vm2, %v123_v45 }
 0x123   :  { %v144_v46 = vpop.f32.mrf.mxu2 }
 0x124   :  { %242 = vmatmul.msk.f32.vlgmr.msrb.gmra.mxu3 %vm148_vm2, %v144_v46 }
 0x19f   :  { %v172_v47 = vpop.f32.mrf.mxu3 }
 0x1a0   :  { %v175_v48 = vmul.f32 0.03125, %v172_v47 }
 0x1a2   :  { %v200_v50 = vmul.f32 %v175_v48, %v175_v48  ;;  %v216_v61 = vperm.slane %v175_v48, 0 }
 0x1a4   :  { %v217_v1 = vsub.f32 %v215_v63, %v216_v61 }
 0x1a7   :  { %v196_v49 = vpop.f32.mrf.mxu3 }
 0x1a8   :  { %v199_v51 = vmul.f32 0.03125, %v196_v49 }
 0x1aa   :  { %v201_v52 = vsub.f32 %v199_v51, %v200_v50 }
 0x1ac   :  { %v202_v53 = vmax.f32 %v201_v52, 0.0 }
 0x1ae   :  { %v203_v54 = vadd.f32 1e-05, %v202_v53 }
 0x1b0   :  { %246 = vrsqrt.f32 %v203_v54  ;;  %vm210_vm4 = vweird.f32 %v203_v54 }
 0x1b6   :  { %v247_v55 = vpop.eup %246 }
 0x1b7   :  { %v205_v56 = vmul.f32 %v247_v55, %v203_v54  ;;  %vm211_vm3 = vweird.f32 %v247_v55 }
 0x1b8   :  { %vm212_vm5 = vmor %vm210_vm4, %vm211_vm3 }
 0x1b9   :  { %v206_v57 = vmul.f32 %v247_v55, %v205_v56 }
 0x1bb   :  { %v207_v58 = vmul.f32 0.5, %v206_v57 }
 0x1bd   :  { %v208_v60 = vsub.f32 1.5, %v207_v58 }
 0x1bf   :  { %v209_v62 = vmul.f32 %v247_v55, %v208_v60 }
 0x1c1   :  { %v213_v0 = vsel %vm212_vm5, %v247_v55, %v209_v62 }
 0x1c2   :  { %v218_v2 = vperm.slane %v213_v0, 0 }
 0x1c4   :  { %v219_v3 = vmul.f32 %v218_v2, %v217_v1 }
 0x1c6   :  { %vm220_vm6 = vcmp.ge.f32.partialorder %v219_v3, 0.0  ;;  %v221_v4 = vmul.f32 0.2, %v219_v3 }
 0x1c8   :  { %v222_v5 = vsel %vm220_vm6, %v219_v3, %v221_v4 }
 0x1c9   :  { %v223_v6 = vpack.c.bf16 %v222_v5, %v222_v5 }
 0x1cb   :  { %224 = vst [vmem:[%s350_s4] sm:$0x1] %v223_v6 }

// kernel: gen_conv_forward.4
= control target key start
LH: loop header
LB: loop body
LE: loop exit
PB: predicated region body
PF: predicated region fallthrough
CT: control target
= control target key end

     0   :  { %vm54_vm0 = vcmask 261120   ;;  %v354_v7 = vmov 0.0   ;;  %vm187_vm1 = vcmask 1040384   ;;  %vm183_vm2 = vcmask 7168   ;;  %s453_s1 = inlined_call_operand.vmem [shape: bf16[1,32,128], index: 1, kind: input, shape index: {}]   ;;  %s454_s0 = inlined_call_operand.vmem [shape: bf16[1,32,32], index: 0, kind: input, shape index: {}]   ;;  %s455_s2 = inlined_call_operand.vmem [shape: f32[128,1], index: 2, kind: input, shape index: {}]   ;;  %s456_s3 = inlined_call_operand.vmem [shape: f32[1,128], index: 3, kind: input, shape index: {}]   ;;  %s457_s4 = inlined_call_operand.vmem [shape: bf16[1,32,128], index: 4, kind: output, shape index: {}]  }
   0x1   :  { %v319_v0 = vld [vmem:[%s453_s1 + $0x8] sm:$0xff]  ;;  %v318_v1 = vld [vmem:[%s453_s1] sm:$0xff]  ;;  %v140_v4 = vld [vmem:[%s455_s2 + $0x78] sm:$0xff]  ;;  %22 = vst [vmem:[#allocation2] sm:$0x1] %v354_v7 }
   0x2   :  { %67 = vmatpush.bf16.msra.mxu0 %v319_v0  ;;  %v316_v2 = vld [vmem:[%s454_s0] sm:$0xff]  ;;  %v317_v3 = vld [vmem:[%s454_s0 + $0x8] sm:$0xff]  ;;  %141 = vmatpush.msra.mxu1 %v140_v4  ;;  %v139_v5 = vld [vmem:[%s455_s2 + $0x70] sm:$0xff]  ;;  %23 = vst [vmem:[#allocation3] sm:$0x1] %v354_v7 }
   0x3   :  { %162 = vmatpush.msra.mxu2 %v140_v4  ;;  %v138_v6 = vld [vmem:[%s455_s2 + $0x68] sm:$0xff]  ;;  %v137_v8 = vld [vmem:[%s455_s2 + $0x60] sm:$0xff]  ;;  %v136_v9 = vld [vmem:[%s455_s2 + $0x58] sm:$0xff] }
   0x4   :  { %142 = vmatpush.msra.mxu1 %v139_v5  ;;  %v135_v10 = vld [vmem:[%s455_s2 + $0x50] sm:$0xff]  ;;  %v134_v11 = vld [vmem:[%s455_s2 + $0x48] sm:$0xff]  ;;  %v133_v12 = vld [vmem:[%s455_s2 + $0x40] sm:$0xff] }
   0x5   :  { %163 = vmatpush.msra.mxu2 %v139_v5  ;;  %v132_v14 = vld [vmem:[%s455_s2 + $0x38] sm:$0xff]  ;;  %v131_v15 = vld [vmem:[%s455_s2 + $0x30] sm:$0xff]  ;;  %v130_v16 = vld [vmem:[%s455_s2 + $0x28] sm:$0xff] }
   0x6   :  { %68 = vmatpush.bf16.msra.mxu0 %v318_v1  ;;  %143 = vmatpush.msra.mxu1 %v138_v6  ;;  %v129_v17 = vld [vmem:[%s455_s2 + $0x20] sm:$0xff]  ;;  %v128_v20 = vld [vmem:[%s455_s2 + $0x18] sm:$0xff]  ;;  %v127_v21 = vld [vmem:[%s455_s2 + $0x10] sm:$0xff] }
   0x7   :  { %164 = vmatpush.msra.mxu2 %v138_v6  ;;  %v126_v22 = vld [vmem:[%s455_s2 + $0x8] sm:$0xff]  ;;  %v125_v23 = vld [vmem:[%s455_s2] sm:$0xff] }
   0x8   :  { %144 = vmatpush.msra.mxu1 %v137_v8  ;;  %v80_v46 = vld [vmem:[#allocation2] sm:$0x1] }
   0x9   :  { %310 = vmatmul.msk.bf16.vlgmr.msra.gmra.mxu0 %vm54_vm0, %v316_v2  ;;  %165 = vmatpush.msra.mxu2 %v137_v8  ;;  %v92_v49 = vld [vmem:[#allocation3] sm:$0x1]  ;;  %v182_v55 = vld [vmem:[%s456_s3] sm:$0x1] }
   0xa   :  { %145 = vmatpush.msra.mxu1 %v136_v9  ;;  %312 = vmatpush.msk.msra.mxu3 %vm187_vm1, %v182_v55 }
   0xb   :  { %166 = vmatpush.msra.mxu2 %v136_v9 }
   0xc   :  { %146 = vmatpush.msra.mxu1 %v135_v10  ;;  %314 = vmatpush.msk.msrb.mxu3 %vm187_vm1, %v182_v55 }
   0xd   :  { %167 = vmatpush.msra.mxu2 %v135_v10 }
   0xe   :  { %147 = vmatpush.msra.mxu1 %v134_v11 }
   0xf   :  { %168 = vmatpush.msra.mxu2 %v134_v11 }
  0x10   :  { %148 = vmatpush.msra.mxu1 %v133_v12 }
  0x11   :  { %169 = vmatpush.msra.mxu2 %v133_v12 }
  0x12   :  { %149 = vmatpush.msra.mxu1 %v132_v14 }
  0x13   :  { %170 = vmatpush.msra.mxu2 %v132_v14 }
  0x14   :  { %150 = vmatpush.msra.mxu1 %v131_v15 }
  0x15   :  { %171 = vmatpush.msra.mxu2 %v131_v15 }
  0x16   :  { %151 = vmatpush.msra.mxu1 %v130_v16 }
  0x17   :  { %172 = vmatpush.msra.mxu2 %v130_v16 }
  0x18   :  { %152 = vmatpush.msra.mxu1 %v129_v17 }
  0x19   :  { %311 = vmatmul.msk.bf16.gmra.mxu0 %vm54_vm0, %v317_v3  ;;  %173 = vmatpush.msra.mxu2 %v129_v17 }
  0x1a   :  { %153 = vmatpush.msra.mxu1 %v128_v20 }
  0x1b   :  { %174 = vmatpush.msra.mxu2 %v128_v20 }
  0x1c   :  { %154 = vmatpush.msra.mxu1 %v127_v21 }
  0x1d   :  { %175 = vmatpush.msra.mxu2 %v127_v21 }
  0x1e   :  { %155 = vmatpush.msra.mxu1 %v126_v22 }
  0x1f   :  { %176 = vmatpush.msra.mxu2 %v126_v22 }
  0x20   :  { %156 = vmatpush.msra.mxu1 %v125_v23 }
  0x21   :  { %177 = vmatpush.msra.mxu2 %v125_v23 }
  0x86   :  { %v70_v13 = vpop.f32.mrf.mxu0 }
  0x87   :  { %v93_v26 = vmul.f32 %v70_v13, %v70_v13 }
  0x8e   :  { %v72_v18 = vpop.f32.mrf.mxu0 }
  0x8f   :  { %v428_v19 = vpack.c.bf16 %v72_v18, %v70_v13  ;;  %v94_v25 = vmul.f32 %v72_v18, %v72_v18  ;;  %v81_v27 = vadd.f32 %v72_v18, %v70_v13 }
  0x91   :  { %v97_v29 = vadd.f32 %v94_v25, %v93_v26  ;;  %v332_v8 = vunpack.c.l.bf16 %v428_v19  ;;  %v333_v10 = vunpack.c.h.bf16 %v428_v19 }
  0x96   :  { %v75_v24 = vpop.f32.mrf.mxu0 }
  0x97   :  { %v95_v28 = vmul.f32 %v75_v24, %v75_v24  ;;  %v82_v30 = vadd.f32 %v81_v27, %v75_v24 }
  0x99   :  { %v98_v32 = vadd.f32 %v97_v29, %v95_v28 }
  0x9e   :  { %v77_v31 = vpop.f32.mrf.mxu0 }
  0x9f   :  { %v83_v33 = vadd.f32 %v82_v30, %v77_v31  ;;  %v96_v34 = vmul.f32 %v77_v31, %v77_v31  ;;  %v328_v35 = vpack.c.bf16 %v77_v31, %v75_v24 }
  0xa1   :  { %v84_v36 = vrot.slane %v83_v33, 4  ;;  %v99_v37 = vadd.f32 %v98_v32, %v96_v34  ;;  %v336_v11 = vunpack.c.l.bf16 %v328_v35  ;;  %v337_v12 = vunpack.c.h.bf16 %v328_v35 }
  0xa3   :  { %v85_v38 = vadd.f32 %v84_v36, %v83_v33  ;;  %v100_v39 = vrot.slane %v99_v37, 4 }
  0xa5   :  { %v86_v40 = vrot.slane %v85_v38, 2  ;;  %v101_v41 = vadd.f32 %v100_v39, %v99_v37 }
  0xa7   :  { %v87_v42 = vadd.f32 %v86_v40, %v85_v38  ;;  %v102_v43 = vrot.slane %v101_v41, 2 }
  0xa9   :  { %v88_v44 = vrot.slane %v87_v42, 1  ;;  %v103_v45 = vadd.f32 %v102_v43, %v101_v41 }
  0xab   :  { %v89_v47 = vadd.f32 %v88_v44, %v87_v42  ;;  %v104_v48 = vrot.slane %v103_v45, 1 }
  0xad   :  { %v90_v50 = vadd.f32 %v89_v47, %v80_v46  ;;  %v105_v51 = vadd.f32 %v104_v48, %v103_v45 }
  0xaf   :  { %91 = vst [vmem:[#allocation2] sm:$0x1] %v90_v50  ;;  %v106_v52 = vadd.f32 %v105_v51, %v92_v49 }
  0xb1   :  { %107 = vst [vmem:[#allocation3] sm:$0x1] %v106_v52 }
  0xb6   :  { %v124_v53 = vld [vmem:[#allocation2] sm:$0x1] }
  0xb7   :  { %157 = vmatmul.f32.vlgmr.msra.gmra.mxu1 %v124_v53 }
  0xb8   :  { %v161_v54 = vld [vmem:[#allocation3] sm:$0x1] }
  0xb9   :  { %178 = vmatmul.f32.vlgmr.msra.gmra.mxu2 %v161_v54 }
 0x134   :  { %v158_v56 = vpop.f32.mrf.mxu1 }
 0x135   :  { %313 = vmatmul.msk.f32.vlgmr.msra.gmra.mxu3 %vm183_vm2, %v158_v56 }
 0x13c   :  { %v179_v57 = vpop.f32.mrf.mxu2 }
 0x13d   :  { %315 = vmatmul.msk.f32.vlgmr.msrb.gmra.mxu3 %vm183_vm2, %v179_v57 }
 0x1b8   :  { %v208_v58 = vpop.f32.mrf.mxu3 }
 0x1b9   :  { %v211_v59 = vmul.f32 0.0078125, %v208_v58 }
 0x1bb   :  { %v236_v61 = vmul.f32 %v211_v59, %v211_v59  ;;  %v258_v6 = vperm.slane %v211_v59, 0 }
 0x1bd   :  { %v259_v13 = vsub.f32 %v332_v8, %v258_v6  ;;  %v260_v15 = vsub.f32 %v333_v10, %v258_v6  ;;  %v261_v16 = vsub.f32 %v336_v11, %v258_v6  ;;  %v262_v17 = vsub.f32 %v337_v12, %v258_v6 }
 0x1c0   :  { %v232_v60 = vpop.f32.mrf.mxu3 }
 0x1c1   :  { %v235_v62 = vmul.f32 0.0078125, %v232_v60 }
 0x1c3   :  { %v237_v63 = vsub.f32 %v235_v62, %v236_v61 }
 0x1c5   :  { %v238_v0 = vmax.f32 %v237_v63, 0.0 }
 0x1c7   :  { %v239_v1 = vadd.f32 1e-05, %v238_v0 }
 0x1c9   :  { %352 = vrsqrt.f32 %v239_v1  ;;  %vm246_vm4 = vweird.f32 %v239_v1 }
 0x1cf   :  { %v353_v2 = vpop.eup %352 }
 0x1d0   :  { %v241_v3 = vmul.f32 %v353_v2, %v239_v1  ;;  %vm247_vm3 = vweird.f32 %v353_v2 }
 0x1d1   :  { %vm248_vm5 = vmor %vm246_vm4, %vm247_vm3 }
 0x1d2   :  { %v242_v4 = vmul.f32 %v353_v2, %v241_v3 }
 0x1d4   :  { %v243_v5 = vmul.f32 0.5, %v242_v4 }
 0x1d6   :  { %v244_v7 = vsub.f32 1.5, %v243_v5 }
 0x1d8   :  { %v245_v9 = vmul.f32 %v353_v2, %v244_v7 }
 0x1da   :  { %v249_v14 = vsel %vm248_vm5, %v353_v2, %v245_v9 }
 0x1db   :  { %v263_v18 = vperm.slane %v249_v14, 0 }
 0x1dd   :  { %v264_v20 = vmul.f32 %v263_v18, %v259_v13  ;;  %v265_v21 = vmul.f32 %v263_v18, %v260_v15  ;;  %v266_v22 = vmul.f32 %v263_v18, %v261_v16  ;;  %v267_v23 = vmul.f32 %v263_v18, %v262_v17 }
 0x1df   :  { %vm268_vm6 = vcmp.ge.f32.partialorder %v264_v20, 0.0  ;;  %vm269_vm7 = vcmp.ge.f32.partialorder %v265_v21, 0.0  ;;  %vm270_vm8 = vcmp.ge.f32.partialorder %v266_v22, 0.0  ;;  %vm271_vm9 = vcmp.ge.f32.partialorder %v267_v23, 0.0 }
 0x1e0   :  { %v272_v24 = vmul.f32 0.2, %v264_v20  ;;  %v273_v25 = vmul.f32 0.2, %v265_v21  ;;  %v274_v19 = vmul.f32 0.2, %v266_v22 }
 0x1e1   :  { %v275_v26 = vmul.f32 0.2, %v267_v23 }
 0x1e2   :  { %v276_v27 = vsel %vm268_vm6, %v264_v20, %v272_v24  ;;  %v277_v28 = vsel %vm269_vm7, %v265_v21, %v273_v25  ;;  %v278_v29 = vsel %vm270_vm8, %v266_v22, %v274_v19 }
 0x1e3   :  { %v279_v30 = vsel %vm271_vm9, %v267_v23, %v275_v26  ;;  %v341_v31 = vpack.c.bf16 %v277_v28, %v276_v27 }
 0x1e4   :  { %v346_v32 = vpack.c.bf16 %v279_v30, %v278_v29 }
 0x1e5   :  { %342 = vst [vmem:[%s457_s4] sm:$0xff] %v341_v31  }
 0x1e6   :  { %350 = vst [vmem:[%s457_s4 + $0x8] sm:$0xff] %v346_v32  }

// kernel: gen_conv_forward.5
= control target key start
LH: loop header
LB: loop body
LE: loop exit
PB: predicated region body
PF: predicated region fallthrough
CT: control target
= control target key end

     0   :  { %vm76_vm0 = vcmask 130048   ;;  %s372_s1 = inlined_call_operand.vmem [shape: bf16[1,16,128], index: 1, kind: input, shape index: {}]   ;;  %s373_s0 = inlined_call_operand.vmem [shape: bf16[1,128,16], index: 0, kind: input, shape index: {}]   ;;  %s374_s2 = inlined_call_operand.vmem [shape: f32[1,128,128], index: 2, kind: output, shape index: {}]  }
   0x1   :  { %v238_v0 = vld [vmem:[%s372_s1] sm:$0xff]  ;;  %v232_v2 = vld [vmem:[%s373_s0 + $0x10] sm:$0xff]  ;;  %v231_v5 = vld [vmem:[%s373_s0 + $0x8] sm:$0xff] }
   0x2   :  { %v230_v1 = vld [vmem:[%s373_s0] sm:$0xff]  ;;  %108 = vmatpush.bf16.msra.mxu0 %v238_v0  ;;  %239 = vmatpush.bf16.msra.mxu1 %v238_v0  ;;  %v236_v4 = vld [vmem:[%s373_s0 + $0x30] sm:$0xff]  ;;  %v233_v6 = vld [vmem:[%s373_s0 + $0x18] sm:$0xff] }
   0x3   :  { %v234_v3 = vld [vmem:[%s373_s0 + $0x20] sm:$0xff]  ;;  %240 = vmatpush.bf16.msra.mxu2 %v238_v0  ;;  %241 = vmatpush.bf16.msra.mxu3 %v238_v0  ;;  %v235_v7 = vld [vmem:[%s373_s0 + $0x28] sm:$0xff]  ;;  %v237_v8 = vld [vmem:[%s373_s0 + $0x38] sm:$0xff] }
   0x5   :  { %222 = vmatmul.msk.bf16.vlgmr.msra.gmra.mxu0 %vm76_vm0, %v230_v1  ;;  %224 = vmatmul.msk.bf16.vlgmr.msra.gmra.mxu1 %vm76_vm0, %v232_v2 }
   0x6   :  { %226 = vmatmul.msk.bf16.vlgmr.msra.gmra.mxu2 %vm76_vm0, %v234_v3  ;;  %228 = vmatmul.msk.bf16.vlgmr.msra.gmra.mxu3 %vm76_vm0, %v236_v4 }
  0x15   :  { %223 = vmatmul.msk.bf16.gmra.mxu0 %vm76_vm0, %v231_v5  ;;  %225 = vmatmul.msk.bf16.gmra.mxu1 %vm76_vm0, %v233_v6 }
  0x16   :  { %227 = vmatmul.msk.bf16.gmra.mxu2 %vm76_vm0, %v235_v7  ;;  %229 = vmatmul.msk.bf16.gmra.mxu3 %vm76_vm0, %v237_v8 }
  0x82   :  { %v110_v9 = vpop.f32.mrf.mxu0  ;;  %v120_v10 = vpop.f32.mrf.mxu1 }
  0x83   :  { %242 = vtanh.f32 %v110_v9 }
  0x84   :  { %244 = vtanh.f32 %v120_v10 }
  0x89   :  { %v243_v11 = vpop.eup %242  ;;  %v130_v12 = vpop.f32.mrf.mxu2 }
  0x8a   :  { %v140_v13 = vpop.f32.mrf.mxu3  ;;  %v245_v14 = vpop.eup %244  ;;  %166 = vst [vmem:[%s374_s2] sm:$0xff] %v243_v11  ;;  %246 = vtanh.f32 %v130_v12 }
  0x8b   :  { %v112_v15 = vpop.f32.mrf.mxu0  ;;  %v122_v16 = vpop.f32.mrf.mxu1  ;;  %170 = vst [vmem:[%s374_s2 + $0x20] sm:$0xff] %v245_v14  ;;  %248 = vtanh.f32 %v140_v13 }
  0x8c   :  { %250 = vtanh.f32 %v112_v15 }
  0x8d   :  { %252 = vtanh.f32 %v122_v16 }
  0x90   :  { %v247_v17 = vpop.eup %246 }
  0x91   :  { %v249_v18 = vpop.eup %248  ;;  %174 = vst [vmem:[%s374_s2 + $0x40] sm:$0xff] %v247_v17  ;;  %v132_v19 = vpop.f32.mrf.mxu2 }
  0x92   :  { %v142_v20 = vpop.f32.mrf.mxu3  ;;  %v251_v21 = vpop.eup %250  ;;  %178 = vst [vmem:[%s374_s2 + $0x60] sm:$0xff] %v249_v18  ;;  %254 = vtanh.f32 %v132_v19 }
  0x93   :  { %v115_v22 = vpop.f32.mrf.mxu0  ;;  %v125_v23 = vpop.f32.mrf.mxu1  ;;  %167 = vst [vmem:[%s374_s2 + $0x8] sm:$0xff] %v251_v21  ;;  %256 = vtanh.f32 %v142_v20 }
  0x94   :  { %v253_v24 = vpop.eup %252  ;;  %258 = vtanh.f32 %v115_v22 }
  0x95   :  { %171 = vst [vmem:[%s374_s2 + $0x28] sm:$0xff] %v253_v24  ;;  %260 = vtanh.f32 %v125_v23 }
  0x98   :  { %v255_v25 = vpop.eup %254 }
  0x99   :  { %v257_v26 = vpop.eup %256  ;;  %175 = vst [vmem:[%s374_s2 + $0x48] sm:$0xff] %v255_v25  ;;  %v135_v27 = vpop.f32.mrf.mxu2 }
  0x9a   :  { %v145_v28 = vpop.f32.mrf.mxu3  ;;  %v259_v29 = vpop.eup %258  ;;  %179 = vst [vmem:[%s374_s2 + $0x68] sm:$0xff] %v257_v26  ;;  %262 = vtanh.f32 %v135_v27 }
  0x9b   :  { %v117_v30 = vpop.f32.mrf.mxu0  ;;  %v127_v31 = vpop.f32.mrf.mxu1  ;;  %168 = vst [vmem:[%s374_s2 + $0x10] sm:$0xff] %v259_v29  ;;  %264 = vtanh.f32 %v145_v28 }
  0x9c   :  { %v261_v32 = vpop.eup %260  ;;  %266 = vtanh.f32 %v117_v30 }
  0x9d   :  { %172 = vst [vmem:[%s374_s2 + $0x30] sm:$0xff] %v261_v32  ;;  %268 = vtanh.f32 %v127_v31 }
  0xa0   :  { %v263_v33 = vpop.eup %262 }
  0xa1   :  { %v265_v34 = vpop.eup %264  ;;  %176 = vst [vmem:[%s374_s2 + $0x50] sm:$0xff] %v263_v33  ;;  %v137_v35 = vpop.f32.mrf.mxu2 }
  0xa2   :  { %v147_v36 = vpop.f32.mrf.mxu3  ;;  %v267_v37 = vpop.eup %266  ;;  %180 = vst [vmem:[%s374_s2 + $0x70] sm:$0xff] %v265_v34  ;;  %270 = vtanh.f32 %v137_v35 }
  0xa3   :  { %v269_v38 = vpop.eup %268  ;;  %169 = vst [vmem:[%s374_s2 + $0x18] sm:$0xff] %v267_v37  ;;  %272 = vtanh.f32 %v147_v36 }
  0xa4   :  { %173 = vst [vmem:[%s374_s2 + $0x38] sm:$0xff] %v269_v38 }
  0xa8   :  { %v271_v39 = vpop.eup %270 }
  0xa9   :  { %v273_v40 = vpop.eup %272  ;;  %177 = vst [vmem:[%s374_s2 + $0x58] sm:$0xff] %v271_v39 }
  0xaa   :  { %181 = vst [vmem:[%s374_s2 + $0x78] sm:$0xff] %v273_v40 }

</bundles_post_ra>
